<compile_context>
chip_gen: v6e
topology: v6e:2x2x1
jax: 0.10.0
libtpu: 0.0.40
codegen_flags: <defaults>
</compile_context>

<pallas_src>
import functools

import jax
import jax.numpy as jnp
from jax import lax
from jax.experimental import pallas as pl
from jax.experimental.pallas import tpu as pltpu

# ---- static shape config (28x28 single-channel input is forced by fc1(512)) ----
H0 = W0 = 28
W0P = 32                               # image width padded to 32 lanes
K = 5
C1 = 16
C2 = 32
H1, W1 = H0 - K + 1, W0 - K + 1        # 24, 24   (conv1 output)
H1P, W1P = H1 // 2, W1 // 2            # 12, 12   (pool1 output)
H2, W2 = H1P - K + 1, W1P - K + 1      # 8, 8     (conv2 output)
H2P, W2P = H2 // 2, W2 // 2            # 4, 4     (pool2 output)
FLAT = C2 * H2P * W2P                  # 512
FC1 = 256
NCLS = 10
NPAD = 128                             # lane-dense padded logits width

WC1 = W1 * C1                          # 384  conv1 packed (w, c) lane width
PC1 = W1P * C1                         # 192  pool1 packed lane width
WC2 = W2 * C2                          # 256  conv2 packed lane width
PC2 = W2P * C2                         # 128  pool2 packed lane width
KW0 = K * W0P                          # 160  fused conv1 contraction depth


def _cnn_kernel(x_ref, wb1_ref, b1_ref, s1_ref, wb2_ref, b2_ref, s2_ref,
                wfc1_ref, bfc1_ref, wfc2_ref, bfc2_ref,
                out_ref, h1_ref, *, shift1, shift2):
    f32, bf16 = jnp.float32, jnp.bfloat16
    bt = out_ref.shape[0]                                   # batch tile (static)

    # ---------- conv1: ONE fused MXU matmul (contraction over (kh, iw) = 160) ----------
    lhs1 = x_ref[...].reshape(H1 * bt, KW0)                               # bf16
    acc1 = jnp.dot(lhs1, wb1_ref[...], preferred_element_type=f32)        # (24*bt, 384)

    # ---------- 2x2 max-pool + bias + relu ----------
    a1 = acc1.reshape(H1P, 2, bt, WC1)
    a1 = jnp.maximum(a1[:, 0], a1[:, 1]).reshape(H1P * bt, WC1)           # pool over H
    m1 = jnp.maximum(a1, pltpu.roll(a1, shift=shift1, axis=1))            # pair w, w+1 (XLU)
    p1 = jnp.dot(m1.astype(bf16), s1_ref[...],
                 preferred_element_type=f32)                              # even-w select
    h1_ref[...] = jnp.maximum(p1 + b1_ref[0], 0.0).astype(bf16).reshape(H1P, bt, PC1)

    # ---------- conv2: 5 band matmuls (bf16), f32 accumulation, no zero-fill ----------
    acc2 = jnp.dot(h1_ref[0:H2, :, :].reshape(H2 * bt, PC1), wb2_ref[0],
                   preferred_element_type=f32)                            # (8*bt, 256)
    for kh in range(1, K):
        acc2 = acc2 + jnp.dot(h1_ref[kh:kh + H2, :, :].reshape(H2 * bt, PC1),
                              wb2_ref[kh], preferred_element_type=f32)

    a2 = acc2.reshape(H2P, 2, bt, WC2)
    a2 = jnp.maximum(a2[:, 0], a2[:, 1]).reshape(H2P * bt, WC2)           # pool over H
    m2 = jnp.maximum(a2, pltpu.roll(a2, shift=shift2, axis=1))
    p2 = jnp.dot(m2.astype(bf16), s2_ref[...], preferred_element_type=f32)
    h2 = jnp.maximum(p2 + b2_ref[0], 0.0).astype(bf16).reshape(H2P, bt, PC2)

    # ---------- flatten in registers, fc1 as ONE MXU matmul, fc2 lane-dense ----------
    flat = jnp.concatenate([h2[0], h2[1], h2[2], h2[3]], axis=-1)         # (bt, 512) bf16
    h3 = jnp.maximum(
        jnp.dot(flat, wfc1_ref[...], preferred_element_type=f32) + bfc1_ref[0], 0.0)
    out_ref[...] = (jnp.dot(h3.astype(bf16), wfc2_ref[...],
                            preferred_element_type=f32) + bfc2_ref[0])    # (bt, 128)


# ------------------------- host-side (plain JAX) glue -------------------------

def _round_up(n, m):
    return ((n + m - 1) // m) * m


def _pool_even_select(num_out, cw):
    """0/1 selector picking even w-groups from packed (w, c) lanes: (2*no*cw, no*cw)."""
    rows = 2 * num_out * cw
    cols = num_out * cw
    r = jnp.arange(rows)
    w = r // cw
    c = r % cw
    onehot = jax.nn.one_hot((w // 2) * cw + c, cols, dtype=jnp.float32)
    sel = onehot * (w % 2 == 0).astype(jnp.float32)[:, None]
    return sel.astype(jnp.bfloat16)


def _band_conv1_fused(w1):               # w1: (16, 1, 5, 5) torch OIHW
    wt = jnp.transpose(w1[:, 0], (1, 2, 0))                             # (kh, kw, oc)
    kwi = jnp.arange(W0)[:, None] - jnp.arange(W1)[None, :]             # (28, 24) = iw - ow
    valid = ((kwi >= 0) & (kwi < K)).astype(jnp.float32)
    band = wt[:, jnp.clip(kwi, 0, K - 1), :] * valid[None, :, :, None]  # (5, 28, 24, 16)
    band = band.reshape(K, W0, WC1)                                     # (5, 28, 384)
    band = jnp.pad(band, ((0, 0), (0, W0P - W0), (0, 0)))               # (5, 32, 384)
    return band.reshape(KW0, WC1).astype(jnp.bfloat16)                  # (160, 384)


def _band_conv2(w2):                      # w2: (32, 16, 5, 5) torch OIHW
    wt = jnp.transpose(w2, (2, 3, 1, 0))                                # (kh, kw, ic, oc)
    kwi = jnp.arange(W1P)[:, None] - jnp.arange(W2)[None, :]            # (12, 8)
    valid = ((kwi >= 0) & (kwi < K)).astype(jnp.float32)
    band = wt[:, jnp.clip(kwi, 0, K - 1), :, :] * valid[None, :, :, None, None]
    band = jnp.transpose(band, (0, 1, 3, 2, 4))                         # (5, 12, 16, 8, 32)
    return band.reshape(K, PC1, WC2).astype(jnp.bfloat16)               # (5, 192, 256)


def _permute_fc1(fc1_w):                  # fc1_w: (256, 512); torch flat idx = oc*16 + hp*4 + wp
    hp = jnp.arange(H2P)[:, None, None]
    wp = jnp.arange(W2P)[None, :, None]
    oc = jnp.arange(C2)[None, None, :]
    src = (oc * (H2P * W2P) + hp * W2P + wp).reshape(-1)     # our flatten order = (hp, wp, oc)
    return fc1_w.T[src].astype(jnp.bfloat16)                 # (512, 256)


def _wants_two_grid_steps():
    """True on chips where a single grid step would leave a TensorCore idle."""
    try:
        kind = jax.devices()[0].device_kind.lower()
    except Exception:
        return False
    return any(tag in kind for tag in ("v7", "7x", "v4", "v5p"))


_ROLL_NUMPY_SEMANTICS = None


def _roll_matches_numpy():
    """One-time TPU probe: does pltpu.roll follow jnp.roll's shift convention?"""
    global _ROLL_NUMPY_SEMANTICS
    if _ROLL_NUMPY_SEMANTICS is None:
        def probe(x_ref, o_ref):
            o_ref[...] = pltpu.roll(x_ref[...], shift=1, axis=1)

        x = lax.broadcasted_iota(jnp.float32, (8, 128), 1)
        out = pl.pallas_call(
            probe, out_shape=jax.ShapeDtypeStruct((8, 128), jnp.float32))(x)
        # jnp.roll convention: out[0,0] == x[0,127] == 127; otherwise out[0,0] == 1.
        _ROLL_NUMPY_SEMANTICS = bool(out[0, 0] > 64.0)
    return _ROLL_NUMPY_SEMANTICS


def model_cnn_forward(x_nchw, params, block_batch=128):
    """Pallas forward pass matching ModelCNN.forward (eval mode)."""
    B = x_nchw.shape[0]
    min_steps = 2 if (_wants_two_grid_steps() and B > 16) else 1
    BT = _round_up(min(block_batch, max(16, -(-B // min_steps))), 16)
    Bp = _round_up(B, BT)

    # Layout plumbing (host): pad width to 32 lanes and unroll the 5 conv1
    # kernel-row windows along lanes, so conv1 is one deep (K=160) MXU matmul.
    x = x_nchw[:, 0, :, :].astype(jnp.float32)                       # (B, 28, 28)
    x = jnp.pad(x, ((0, Bp - B), (0, 0), (0, W0P - W0)))             # (Bp, 28, 32)
    xw = jnp.stack([x[:, kh:kh + H1, :] for kh in range(K)], axis=2)  # (Bp, 24, 5, 32)
    x_t = jnp.transpose(xw, (1, 0, 2, 3)).reshape(H1, Bp, KW0).astype(jnp.bfloat16)

    wb1 = _band_conv1_fused(params['conv1_w'])
    b1p = jnp.tile(params['conv1_b'], W1P).reshape(1, PC1)
    s1e = _pool_even_select(W1P, C1)                                 # (384, 192)
    wb2 = _band_conv2(params['conv2_w'])
    b2p = jnp.tile(params['conv2_b'], W2P).reshape(1, PC2)
    s2e = _pool_even_select(W2P, C2)                                 # (256, 128)
    wfc1 = _permute_fc1(params['fc1_w'])
    bfc1 = params['fc1_b'].reshape(1, FC1)
    wfc2 = (jnp.zeros((FC1, NPAD), jnp.float32)
            .at[:, :NCLS].set(params['fc2_w'].T).astype(jnp.bfloat16))
    bfc2 = jnp.zeros((1, NPAD), jnp.float32).at[0, :NCLS].set(params['fc2_b'])

    np_roll = _roll_matches_numpy()
    shift1 = (WC1 - C1) if np_roll else C1       # pairs lane i with lane i + C1
    shift2 = (WC2 - C2) if np_roll else C2

    def const(shape):
        return pl.BlockSpec(shape, lambda g, _n=len(shape): (0,) * _n)

    kernel = functools.partial(_cnn_kernel, shift1=shift1, shift2=shift2)

    out = pl.pallas_call(
        kernel,
        out_shape=jax.ShapeDtypeStruct((Bp, NPAD), jnp.float32),
        grid=(Bp // BT,),
        in_specs=[
            pl.BlockSpec((H1, BT, KW0), lambda g: (0, g, 0)),   # im2row'd images (bf16)
            const((KW0, WC1)),                                  # fused conv1 band weights
            const((1, PC1)),                                    # conv1 bias (packed)
            const((WC1, PC1)),                                  # pool1 even selector
            const((K, PC1, WC2)),                               # conv2 band weights
            const((1, PC2)),                                    # conv2 bias (packed)
            const((WC2, PC2)),                                  # pool2 even selector
            const((FLAT, FC1)),                                 # fc1 weight (permuted)
            const((1, FC1)),                                    # fc1 bias
            const((FC1, NPAD)),                                 # fc2 weight (lane-padded)
            const((1, NPAD)),                                   # fc2 bias (lane-padded)
        ],
        out_specs=pl.BlockSpec((BT, NPAD), lambda g: (g, 0)),
        scratch_shapes=[
            pltpu.VMEM((H1P, BT, PC1), jnp.bfloat16),           # pool1+relu activations
        ],
        compiler_params=pltpu.CompilerParams(
            dimension_semantics=("parallel",),
            vmem_limit_bytes=48 * 1024 * 1024),
    )(x_t, wb1, b1p, s1e, wb2, b2p, s2e, wfc1, bfc1, wfc2, bfc2)

    return out[:B, :NCLS]


def init_params(key):
    """Deterministic PyTorch-style uniform(-1/sqrt(fan_in), 1/sqrt(fan_in)) init."""
    ks = jax.random.split(key, 8)

    def u(k, shape, fan_in):
        bound = 1.0 / (fan_in ** 0.5)
        return jax.random.uniform(k, shape, jnp.float32, -bound, bound)

    return {
        'conv1_w': u(ks[0], (C1, 1, K, K), 1 * K * K),
        'conv1_b': u(ks[1], (C1,), 1 * K * K),
        'conv2_w': u(ks[2], (C2, C1, K, K), C1 * K * K),
        'conv2_b': u(ks[3], (C2,), C1 * K * K),
        'fc1_w': u(ks[4], (FC1, FLAT), FLAT),
        'fc1_b': u(ks[5], (FC1,), FLAT),
        'fc2_w': u(ks[6], (NCLS, FC1), FC1),
        'fc2_b': u(ks[7], (NCLS,), FC1),
    }


def reference_forward(x_nchw, p):
    """Plain-JAX replica of the PyTorch forward (eval mode), full f32 precision."""
    dn = ('NCHW', 'OIHW', 'NCHW')
    prec = lax.Precision.HIGHEST
    h = lax.conv_general_dilated(x_nchw, p['conv1_w'], (1, 1), 'VALID',
                                 dimension_numbers=dn, precision=prec)
    h = h + p['conv1_b'][None, :, None, None]
    h = lax.reduce_window(h, -jnp.inf, lax.max, (1, 1, 2, 2), (1, 1, 2, 2), 'VALID')
    h = jnp.maximum(h, 0.0)
    h = lax.conv_general_dilated(h, p['conv2_w'], (1, 1), 'VALID',
                                 dimension_numbers=dn, precision=prec)
    h = h + p['conv2_b'][None, :, None, None]
    h = lax.reduce_window(h, -jnp.inf, lax.max, (1, 1, 2, 2), (1, 1, 2, 2), 'VALID')
    h = jnp.maximum(h, 0.0)
    h = h.reshape(h.shape[0], -1)                   # (B, 512), C-major like .view(-1, 512)
    h = jnp.maximum(jnp.dot(h, p['fc1_w'].T, precision=prec) + p['fc1_b'], 0.0)
    return jnp.dot(h, p['fc2_w'].T, precision=prec) + p['fc2_b']


if __name__ == "__main__":
    key = jax.random.PRNGKey(0)
    kx, kp = jax.random.split(key)
    B = 8
    x = jax.random.normal(kx, (B, 1, H0, W0), jnp.float32)
    params = init_params(kp)

    out = jax.block_until_ready(model_cnn_forward(x, params))
    ref = jax.block_until_ready(reference_forward(x, params))

    assert out.shape == (B, NCLS)
    max_diff = float(jnp.max(jnp.abs(out - ref)))
    # bf16 MXU operands with f32 accumulation: typical max abs diff ~1e-3..1e-2
    # against the full-f32 reference; 3e-2 still catches any layout/indexing bug.
    assert max_diff < 3e-2, f"mismatch vs reference: max abs diff = {max_diff}"
    print("KERNEL_OK")
</pallas_src>

<mosaic_0001>
module attributes {stable_mosaic.version = 11 : i64} {
  func.func @probe(%arg0: memref<8x128xf32, #tpu.memory_space<vmem>>, %arg1: memref<8x128xf32, #tpu.memory_space<vmem>>) attributes {dimension_semantics = [], scalar_prefetch = 0 : i64, scratch_operands = 0 : i64, tpu.core_type = #tpu.core_type<tc>} {
    %c0 = arith.constant 0 : index
    %c0_0 = arith.constant 0 : index
    %0 = vector.load %arg0[%c0, %c0_0] : memref<8x128xf32, #tpu.memory_space<vmem>>, vector<8x128xf32>
    %c1_i32 = arith.constant 1 : i32
    %1 = tpu.dynamic_rotate %0 by %c1_i32 dim 1 : vector<8x128xf32>, i32 -> vector<8x128xf32>
    %c0_1 = arith.constant 0 : index
    %c0_2 = arith.constant 0 : index
    %2 = vector.load %arg1[%c0_1, %c0_2] : memref<8x128xf32, #tpu.memory_space<vmem>>, vector<8x128xf32>
    tpu.vector_store %arg1[%c0_1, %c0_2], %1 {strides = array<i32>} : memref<8x128xf32, #tpu.memory_space<vmem>>, vector<8x128xf32>,
    return
  }
}

</mosaic_0001>

<bundles_post_ra>
// kernel: tpu_custom_call.1
= control target key start
LH: loop header
LB: loop body
LE: loop exit
PB: predicated region body
PF: predicated region fallthrough
CT: control target
= control target key end

     0   :  { %6 = vsyncpa [#allocation3], 0  ;;  %s106_s0 = inlined_call_operand.hbm [shape: f32[8,128], index: 0, kind: input, shape index: {}]   ;;  %s107_s1 = inlined_call_operand.hbm [shape: f32[8,128], index: 1, kind: output, shape index: {}]  }
   0x1   :  { %7 = vsyncpa [#allocation4], 0  ;;  %s87_s6 = smov [#allocation2]  }
   0x2   :  { %s14_s7 = sshll.u32 %s87_s6, 4  ;;  %s15_s7 = int_to_ptr.vmem [resolvable:$true] %s14_s7 }
   0x3   :  { %s51_s8 = scalar_lea.vmem %s15_s7, 128  ;;  %p56_p1 = scmp.lt.s32.totalorder %s15_s7, %s15_s7 }
   0x4   :  { %p52_p0 = scmp.ne.s32.totalorder %s15_s7, %s51_s8  ;;  %p57_p2 = scmp.lt.s32.totalorder %s51_s8, %s51_s8 }
   0x6   :  { %p58_p3 = por %p57_p2, %p56_p1 }
   0x8   :  { %p59_p4 = pnand %p58_p3, %p52_p0 }
   0xa   :  { %62 = shalt.err (!%p59_p4)
}
   0xb   :  { %17 = dma.hbm_to_vmem [thread:$0]  %s106_s0, 128, %s15_s7, [#allocation3]  }
   0xc   :  { %83 = dma.done.wait [#allocation3], 128  }
   0xd   :  { %84 = vsyncadd [#allocation3], 4294967168  ;;  %v21_v0 = vld [vmem:[#allocation2] sm:$0xff]  ;;  %s88_s11 = smov 1   ;;  %s89_s12 = smov [#allocation5]  }
   0xe   :  { %22 = vrot.lane.b32.xlu0 %v21_v0, %s88_s11  ;;  %s31_s13 = sshll.u32 %s89_s12, 4  ;;  %s32_s13 = int_to_ptr.vmem [resolvable:$true] %s31_s13 }
   0xf   :  { %s63_s14 = scalar_lea.vmem %s32_s13, 128  ;;  %p68_p6 = scmp.lt.s32.totalorder %s32_s13, %s32_s13 }
  0x10   :  { %p64_p5 = scmp.ne.s32.totalorder %s32_s13, %s63_s14  ;;  %p69_p7 = scmp.lt.s32.totalorder %s63_s14, %s63_s14 }
  0x12   :  { %p70_p8 = por %p69_p7, %p68_p6 }
  0x14   :  { %p71_p9 = pnand %p70_p8, %p64_p5 }
  0x80   :  { %v23_v1 = vpop.permute.xlu0 %22 }
  0x81   :  { %24 = vst [vmem:[#allocation5] sm:$0xff] %v23_v1 }
  0x82   :  { %74 = shalt.err (!%p71_p9)
}
  0x83   :  { %34 = dma.vmem_to_hbm [thread:$0]  %s32_s13, 128, %s107_s1, [#allocation4]  }
  0x84   :  { %85 = dma.done.wait [#allocation4], 128  }
  0x85   :  { %86 = vsyncadd [#allocation4], 4294967168 }
  0x86   :  { %38 = vsyncpa [#allocation3], 1 }
  0x87   :  { %39 = vsyncpa [#allocation4], 1 }

</bundles_post_ra>
